<compile_context>
chip_gen: v6e
topology: v6e:2x2x1
jax: 0.10.0
libtpu: 0.0.40
codegen_flags: <defaults>
</compile_context>

<pallas_src>
import functools

import numpy as np
import jax
import jax.numpy as jnp
from jax.experimental import pallas as pl
from jax.experimental.pallas import tpu as pltpu


def _conv_relu_kernel(x_ref, w_ref, b_ref, mask_ref, o_ref, *,
                      W, KH, KW, pad_h, pad_w, compute_dtype):
    # x_ref    : (Nb, Cin, H*W)      input block, spatial axis flattened (lanes)
    # w_ref    : (Cout, KH*KW*Cin)   weights, tap-major / Cin-minor columns
    # b_ref    : (Cout, 1)           bias
    # mask_ref : (KH*KW, H*W)        1.0 where the tap reads inside the image
    # o_ref    : (Nb, Cout, H*W)     output block (lane-dense stores)
    Nb, Cin, HW = x_ref.shape

    w = w_ref[...]                               # (Cout, K)
    if compute_dtype is not None:                # e.g. bf16 operands on v6e/v7x
        w = w.astype(compute_dtype)
    b = b_ref[...]                               # (Cout, 1)
    masks = mask_ref[...]                        # (KH*KW, HW)

    for n in range(Nb):                          # static, Nb is tiny
        x = x_ref[n]                             # (Cin, HW), rank-2 view

        # im2col with the spatial axis kept in lanes:
        #   xb[(kh*KW + kw)*Cin + c, y*W + x] = x_zero_padded[c, y + kh, x + kw]
        slabs = []
        for kh in range(KH):
            for kw in range(KW):
                dy, dx = kh - pad_h, kw - pad_w
                s = dy * W + dx                  # flat source offset of the tap
                shifted = pltpu.roll(x, (-s) % HW, axis=1) if (s % HW) else x
                if dy == 0 and dx == 0:
                    slabs.append(shifted)        # centre tap: always valid
                else:
                    m = masks[kh * KW + kw][None, :]
                    slabs.append(shifted * m)    # zero taps falling in the pad
        xb = jnp.concatenate(slabs, axis=0)      # (K, HW)
        if compute_dtype is not None:
            xb = xb.astype(compute_dtype)

        # One MXU matmul per image: (Cout, K) @ (K, HW), f32 accumulate.
        acc = jnp.dot(w, xb, preferred_element_type=jnp.float32)
        o_ref[n] = jnp.maximum(acc + b, 0.0).astype(o_ref.dtype)   # bias + ReLU


def _pick_batch_block(n, max_block=8):
    """Largest divisor of n that is <= max_block while keeping >= 2 grid steps
    (so both TensorCores get work on dual-TC chips such as v7x)."""
    best = 1
    for nb in range(1, min(max_block, n) + 1):
        if n % nb == 0 and (n // nb >= 2 or n == 1):
            best = nb
    return best


def conv_relu(x_nchw, weight, bias, *, stride=1, padding=1,
              batch_block=None, compute_dtype=None):
    """Conv2d(kernel_size=K, stride=1, padding=(K-1)//2) + ReLU via Pallas.

    x_nchw : (N, Cin, H, W)       (PyTorch NCHW)
    weight : (Cout, Cin, KH, KW)  (PyTorch OIHW)
    bias   : (Cout,)
    Returns (N, Cout, H, W), matching nn.Conv2d(stride=1, padding=1) + ReLU.
    """
    N, Cin, H, W = x_nchw.shape
    Cout, Cin_w, KH, KW = weight.shape
    assert Cin_w == Cin
    assert stride == 1, "kernel implements the module default stride=1"
    assert KH == 2 * padding + 1 and KW == 2 * padding + 1, (
        "lane-flattened formulation assumes a 'same'-size conv "
        "(kernel_size == 2*padding + 1, the module default 3/1)")

    HW = H * W
    K = KH * KW * Cin
    KK = KH * KW

    # Free row-major reshapes only — no transpose, no padded HBM copy.
    x3 = x_nchw.reshape(N, Cin, HW)
    # OIHW -> (Cout, KH, KW, Cin) -> (Cout, KH*KW*Cin): tap-major / Cin-minor,
    # matching the in-kernel im2col ordering.  Tiny one-time weight prep.
    w2d = jnp.transpose(weight, (0, 2, 3, 1)).reshape(Cout, K)
    b2 = bias.reshape(Cout, 1)

    # Precompute (at trace time, with numpy) the per-tap validity masks that
    # reproduce the zero padding; they depend only on static shapes.
    mm = np.arange(HW)
    rr, cc = mm // W, mm % W
    masks_np = np.ones((KK, HW), dtype=np.float32)
    for kh in range(KH):
        for kw in range(KW):
            dy, dx = kh - padding, kw - padding
            ok = ((rr + dy >= 0) & (rr + dy < H) &
                  (cc + dx >= 0) & (cc + dx < W))
            masks_np[kh * KW + kw] = ok.astype(np.float32)
    masks = jnp.asarray(masks_np).astype(x_nchw.dtype)

    Nb = batch_block if batch_block is not None else _pick_batch_block(N)
    assert N % Nb == 0, "batch_block must divide N"
    grid = (N // Nb,)

    kernel = functools.partial(
        _conv_relu_kernel, W=W, KH=KH, KW=KW,
        pad_h=padding, pad_w=padding, compute_dtype=compute_dtype)

    isz = x_nchw.dtype.itemsize
    cost = pl.CostEstimate(
        flops=2 * N * HW * KH * KW * Cin * Cout,
        transcendentals=0,
        bytes_accessed=(N * Cin * HW + Cout * K + Cout + KK * HW
                        + N * Cout * HW) * isz)

    out3 = pl.pallas_call(
        kernel,
        out_shape=jax.ShapeDtypeStruct((N, Cout, HW), x_nchw.dtype),
        grid_spec=pltpu.PrefetchScalarGridSpec(
            num_scalar_prefetch=0,
            grid=grid,
            in_specs=[
                pl.BlockSpec((Nb, Cin, HW), lambda i: (i, 0, 0)),
                pl.BlockSpec((Cout, K), lambda i: (0, 0)),
                pl.BlockSpec((Cout, 1), lambda i: (0, 0)),
                pl.BlockSpec((KK, HW), lambda i: (0, 0)),
            ],
            out_specs=pl.BlockSpec((Nb, Cout, HW), lambda i: (i, 0, 0)),
        ),
        compiler_params=pltpu.CompilerParams(
            dimension_semantics=("parallel",)),
        cost_estimate=cost,
    )(x3, w2d, b2, masks)

    # Free reshape back to NCHW (no transpose: output is already (N, C, H*W)).
    return out3.reshape(N, Cout, H, W)


if __name__ == "__main__":
    # Small shapes consistent with ConvReLu(in_channels=4, out_channels=8).
    N, Cin, H, W = 2, 4, 16, 16
    Cout, KH, KW = 8, 3, 3

    key = jax.random.PRNGKey(0)
    kx, kw, kb = jax.random.split(key, 3)
    x = jax.random.normal(kx, (N, Cin, H, W), dtype=jnp.float32)
    # Deterministic parameter init (Kaiming-uniform-ish scale, like PyTorch).
    fan_in = Cin * KH * KW
    bound = 1.0 / (fan_in ** 0.5)
    weight = jax.random.uniform(kw, (Cout, Cin, KH, KW),
                                minval=-bound, maxval=bound, dtype=jnp.float32)
    bias = jax.random.uniform(kb, (Cout,), minval=-bound, maxval=bound,
                              dtype=jnp.float32)

    out = conv_relu(x, weight, bias)
    out = jax.block_until_ready(out)

    # Reference check against XLA conv + relu (same semantics as nn.Conv2d).
    ref = jax.lax.conv_general_dilated(
        x, weight, window_strides=(1, 1), padding=((1, 1), (1, 1)),
        dimension_numbers=("NCHW", "OIHW", "NCHW"))
    ref = jnp.maximum(ref + bias[None, :, None, None], 0.0)
    assert out.shape == (N, Cout, H, W)
    assert jnp.allclose(out, ref, rtol=1e-4, atol=1e-4), (
        float(jnp.max(jnp.abs(out - ref))))

    print("KERNEL_OK")
</pallas_src>

<mosaic_0001>
module attributes {stable_mosaic.version = 11 : i64} {
  func.func @_conv_relu_kernel(%arg0: i32, %arg1: memref<1x4x256xf32, #tpu.memory_space<vmem>>, %arg2: memref<8x36xf32, #tpu.memory_space<vmem>>, %arg3: memref<8x1xf32, #tpu.memory_space<vmem>>, %arg4: memref<9x256xf32, #tpu.memory_space<vmem>>, %arg5: memref<1x8x256xf32, #tpu.memory_space<vmem>>) attributes {dimension_semantics = [#tpu.dimension_semantics<parallel>], iteration_bounds = array<i64: 2>, scalar_prefetch = 0 : i64, scratch_operands = 0 : i64, tpu.core_type = #tpu.core_type<tc>, window_params = [{transform_indices = @transform_0, window_bounds = array<i64: 1, 4, 256>}, {pipeline_mode = #tpu.pipeline_mode<synchronous>, transform_indices = @transform_1, window_bounds = array<i64: 8, 36>}, {pipeline_mode = #tpu.pipeline_mode<synchronous>, transform_indices = @transform_2, window_bounds = array<i64: 8, 1>}, {pipeline_mode = #tpu.pipeline_mode<synchronous>, transform_indices = @transform_3, window_bounds = array<i64: 9, 256>}, {transform_indices = @transform_4, window_bounds = array<i64: 1, 8, 256>}]} {
    %c0 = arith.constant 0 : index
    %c0_0 = arith.constant 0 : index
    %0 = vector.load %arg2[%c0, %c0_0] : memref<8x36xf32, #tpu.memory_space<vmem>>, vector<8x36xf32>
    %c0_1 = arith.constant 0 : index
    %c0_2 = arith.constant 0 : index
    %1 = vector.load %arg3[%c0_1, %c0_2] : memref<8x1xf32, #tpu.memory_space<vmem>>, vector<8x1xf32>
    %c0_3 = arith.constant 0 : index
    %c0_4 = arith.constant 0 : index
    %2 = vector.load %arg4[%c0_3, %c0_4] : memref<9x256xf32, #tpu.memory_space<vmem>>, vector<9x256xf32>
    %c0_5 = arith.constant 0 : index
    %c0_6 = arith.constant 0 : index
    %c0_7 = arith.constant 0 : index
    %3 = vector.load %arg1[%c0_5, %c0_6, %c0_7] : memref<1x4x256xf32, #tpu.memory_space<vmem>>, vector<1x4x256xf32>
    %4 = vector.shape_cast %3 : vector<1x4x256xf32> to vector<4x256xf32>
    %c17_i32 = arith.constant 17 : i32
    %5 = tpu.dynamic_rotate %4 by %c17_i32 dim 1 : vector<4x256xf32>, i32 -> vector<4x256xf32>
    %6 = vector.extract_strided_slice %2 {offsets = [0, 0], sizes = [1, 256], strides = [1, 1]} : vector<9x256xf32> to vector<1x256xf32>
    %7 = vector.shape_cast %6 : vector<1x256xf32> to vector<256xf32>
    %8 = vector.shape_cast %7 : vector<256xf32> to vector<1x256xf32>
    %9 = vector.broadcast %8 : vector<1x256xf32> to vector<4x256xf32>
    %10 = arith.mulf %5, %9 : vector<4x256xf32>
    %c16_i32 = arith.constant 16 : i32
    %11 = tpu.dynamic_rotate %4 by %c16_i32 dim 1 : vector<4x256xf32>, i32 -> vector<4x256xf32>
    %12 = vector.extract_strided_slice %2 {offsets = [1, 0], sizes = [1, 256], strides = [1, 1]} : vector<9x256xf32> to vector<1x256xf32>
    %13 = vector.shape_cast %12 : vector<1x256xf32> to vector<256xf32>
    %14 = vector.shape_cast %13 : vector<256xf32> to vector<1x256xf32>
    %15 = vector.broadcast %14 : vector<1x256xf32> to vector<4x256xf32>
    %16 = arith.mulf %11, %15 : vector<4x256xf32>
    %c15_i32 = arith.constant 15 : i32
    %17 = tpu.dynamic_rotate %4 by %c15_i32 dim 1 : vector<4x256xf32>, i32 -> vector<4x256xf32>
    %18 = vector.extract_strided_slice %2 {offsets = [2, 0], sizes = [1, 256], strides = [1, 1]} : vector<9x256xf32> to vector<1x256xf32>
    %19 = vector.shape_cast %18 : vector<1x256xf32> to vector<256xf32>
    %20 = vector.shape_cast %19 : vector<256xf32> to vector<1x256xf32>
    %21 = vector.broadcast %20 : vector<1x256xf32> to vector<4x256xf32>
    %22 = arith.mulf %17, %21 : vector<4x256xf32>
    %c1_i32 = arith.constant 1 : i32
    %23 = tpu.dynamic_rotate %4 by %c1_i32 dim 1 : vector<4x256xf32>, i32 -> vector<4x256xf32>
    %24 = vector.extract_strided_slice %2 {offsets = [3, 0], sizes = [1, 256], strides = [1, 1]} : vector<9x256xf32> to vector<1x256xf32>
    %25 = vector.shape_cast %24 : vector<1x256xf32> to vector<256xf32>
    %26 = vector.shape_cast %25 : vector<256xf32> to vector<1x256xf32>
    %27 = vector.broadcast %26 : vector<1x256xf32> to vector<4x256xf32>
    %28 = arith.mulf %23, %27 : vector<4x256xf32>
    %c255_i32 = arith.constant 255 : i32
    %29 = tpu.dynamic_rotate %4 by %c255_i32 dim 1 : vector<4x256xf32>, i32 -> vector<4x256xf32>
    %30 = vector.extract_strided_slice %2 {offsets = [5, 0], sizes = [1, 256], strides = [1, 1]} : vector<9x256xf32> to vector<1x256xf32>
    %31 = vector.shape_cast %30 : vector<1x256xf32> to vector<256xf32>
    %32 = vector.shape_cast %31 : vector<256xf32> to vector<1x256xf32>
    %33 = vector.broadcast %32 : vector<1x256xf32> to vector<4x256xf32>
    %34 = arith.mulf %29, %33 : vector<4x256xf32>
    %c241_i32 = arith.constant 241 : i32
    %35 = tpu.dynamic_rotate %4 by %c241_i32 dim 1 : vector<4x256xf32>, i32 -> vector<4x256xf32>
    %36 = vector.extract_strided_slice %2 {offsets = [6, 0], sizes = [1, 256], strides = [1, 1]} : vector<9x256xf32> to vector<1x256xf32>
    %37 = vector.shape_cast %36 : vector<1x256xf32> to vector<256xf32>
    %38 = vector.shape_cast %37 : vector<256xf32> to vector<1x256xf32>
    %39 = vector.broadcast %38 : vector<1x256xf32> to vector<4x256xf32>
    %40 = arith.mulf %35, %39 : vector<4x256xf32>
    %c240_i32 = arith.constant 240 : i32
    %41 = tpu.dynamic_rotate %4 by %c240_i32 dim 1 : vector<4x256xf32>, i32 -> vector<4x256xf32>
    %42 = vector.extract_strided_slice %2 {offsets = [7, 0], sizes = [1, 256], strides = [1, 1]} : vector<9x256xf32> to vector<1x256xf32>
    %43 = vector.shape_cast %42 : vector<1x256xf32> to vector<256xf32>
    %44 = vector.shape_cast %43 : vector<256xf32> to vector<1x256xf32>
    %45 = vector.broadcast %44 : vector<1x256xf32> to vector<4x256xf32>
    %46 = arith.mulf %41, %45 : vector<4x256xf32>
    %c239_i32 = arith.constant 239 : i32
    %47 = tpu.dynamic_rotate %4 by %c239_i32 dim 1 : vector<4x256xf32>, i32 -> vector<4x256xf32>
    %48 = vector.extract_strided_slice %2 {offsets = [8, 0], sizes = [1, 256], strides = [1, 1]} : vector<9x256xf32> to vector<1x256xf32>
    %49 = vector.shape_cast %48 : vector<1x256xf32> to vector<256xf32>
    %50 = vector.shape_cast %49 : vector<256xf32> to vector<1x256xf32>
    %51 = vector.broadcast %50 : vector<1x256xf32> to vector<4x256xf32>
    %52 = arith.mulf %47, %51 : vector<4x256xf32>
    %53 = tpu.concatenate %10, %16, %22, %28, %4, %34, %40, %46, %52 in 0 : vector<4x256xf32>, vector<4x256xf32>, vector<4x256xf32>, vector<4x256xf32>, vector<4x256xf32>, vector<4x256xf32>, vector<4x256xf32>, vector<4x256xf32>, vector<4x256xf32> -> vector<36x256xf32>
    %cst = arith.constant dense<0.000000e+00> : vector<8x256xf32>
    %54 = tpu.matmul %0, %53, %cst {dimension_numbers = #tpu.dot_dimension_numbers<[1], [0], [0], [1], [0, 0, 1, 1], [], []>} : vector<8x36xf32>, vector<36x256xf32>, vector<8x256xf32> -> vector<8x256xf32>
    %55 = vector.broadcast %1 : vector<8x1xf32> to vector<8x256xf32>
    %56 = arith.addf %54, %55 : vector<8x256xf32>
    %cst_8 = arith.constant 0.000000e+00 : f32
    %57 = vector.broadcast %cst_8 : f32 to vector<8x256xf32>
    %58 = arith.maximumf %56, %57 : vector<8x256xf32>
    %c0_9 = arith.constant 0 : index
    %c0_10 = arith.constant 0 : index
    %c0_11 = arith.constant 0 : index
    %59 = vector.load %arg5[%c0_9, %c0_10, %c0_11] : memref<1x8x256xf32, #tpu.memory_space<vmem>>, vector<1x8x256xf32>
    %60 = vector.shape_cast %59 : vector<1x8x256xf32> to vector<8x256xf32>
    %61 = vector.shape_cast %58 : vector<8x256xf32> to vector<1x8x256xf32>
    tpu.vector_store %arg5[%c0_9, %c0_10, %c0_11], %61 {strides = array<i32>} : memref<1x8x256xf32, #tpu.memory_space<vmem>>, vector<1x8x256xf32>,
    return
  }
  func.func @transform_0(%arg0: i32) -> (i32, i32, i32) {
    %c0_i32 = arith.constant 0 : i32
    %c0_i32_0 = arith.constant 0 : i32
    %c0_i32_1 = arith.constant 0 : i32
    return %arg0, %c0_i32, %c0_i32_0 : i32, i32, i32
  }
  func.func @transform_1(%arg0: i32) -> (i32, i32) {
    %c0_i32 = arith.constant 0 : i32
    %c0_i32_0 = arith.constant 0 : i32
    %c0_i32_1 = arith.constant 0 : i32
    return %c0_i32, %c0_i32_0 : i32, i32
  }
  func.func @transform_2(%arg0: i32) -> (i32, i32) {
    %c0_i32 = arith.constant 0 : i32
    %c0_i32_0 = arith.constant 0 : i32
    %c0_i32_1 = arith.constant 0 : i32
    return %c0_i32, %c0_i32_0 : i32, i32
  }
  func.func @transform_3(%arg0: i32) -> (i32, i32) {
    %c0_i32 = arith.constant 0 : i32
    %c0_i32_0 = arith.constant 0 : i32
    %c0_i32_1 = arith.constant 0 : i32
    return %c0_i32, %c0_i32_0 : i32, i32
  }
  func.func @transform_4(%arg0: i32) -> (i32, i32, i32) {
    %c0_i32 = arith.constant 0 : i32
    %c0_i32_0 = arith.constant 0 : i32
    %c0_i32_1 = arith.constant 0 : i32
    return %arg0, %c0_i32, %c0_i32_0 : i32, i32, i32
  }
}

</mosaic_0001>

<bundles_post_ra>
// kernel: tpu_custom_call.1
= control target key start
LH: loop header
LB: loop body
LE: loop exit
PB: predicated region body
PF: predicated region fallthrough
CT: control target
= control target key end

     0   :  { %9 = vsyncpa [#allocation3], 0  ;;  %s1097_s0 = inlined_call_operand.hbm [shape: f32[2,4,256], index: 0, kind: input, shape index: {}]   ;;  %s1098_s1 = inlined_call_operand.vmem [shape: f32[8,36], index: 1, kind: input, shape index: {}]   ;;  %s1099_s2 = inlined_call_operand.vmem [shape: f32[8,1], index: 2, kind: input, shape index: {}]   ;;  %s1100_s3 = inlined_call_operand.hbm [shape: f32[9,256], index: 3, kind: input, shape index: {}]   ;;  %s1101_s4 = inlined_call_operand.hbm [shape: f32[2,8,256], index: 4, kind: output, shape index: {}]  }
   0x1   :  { %11 = vsyncpa [#allocation3 + $0x1], 0 }
   0x2   :  { %12 = vsyncpa [#allocation6], 0 }
   0x3   :  { %13 = vsyncpa [#allocation4], 0 }
   0x4   :  { %15 = vsyncpa [#allocation4 + $0x1], 0  ;;  %s853_s15 = smov 0   ;;  %s855_s16 = smov 0  }
   0x5   :  { %s857_s17 = smov 0   ;;  %s859_s18 = smov 0  }
   0x6 LB: > { %s874_s19 = sadd.s32 4294967295, %s811_s18   ;;  %s595_s20 = sadd.s32 4294967294, %s811_s18   ;;  %s811_s18 = sphi %s859_s18, %s1123_s18   ;;  %s807_s17 = sphi %s857_s17, %s1122_s17   ;;  %s803_s16 = sphi %s855_s16, %s1121_s16   ;;  %s799_s15 = sphi %s853_s15, %s1120_s15  }
   0x7   : > { %p41_p0 = scmp.ne.s32.totalorder %s803_s16, %s799_s15  ;;  %p1102_p1 = scmp.eq.s32.totalorder %s874_s19, 0 }
   0x8   : > { %p134_p3 = scmp.eq.s32.totalorder %s595_s20, 1  ;;  %p596_p5 = scmp.ge.s32.totalorder %s811_s18, 1 }
   0x9   : > { %p883_p4 = por %p1102_p1, %p41_p0  ;;  %p141_p7 = scmp.lt.s32.totalorder %s811_s18, 3 }
   0xa   : > { %p888_p6 = por %p134_p3, %p41_p0  ;;  %s813_s24 = smov [#allocation5]  }
   0xb   : > { %s1106_s21 = scalar_select %p883_p4, 1, 0 }
   0xc   : > { %s1107_s22 = scalar_select %p888_p6, 1, 0 }
   0xd   : > { %p893_p8 = pnand %p596_p5, %p141_p7  ;;  %s159_s25 = sshll.u32 %s813_s24, 4  ;;  %s160_s25 = int_to_ptr.vmem [resolvable:$true] %s159_s25 }
   0xe   : > { %s907_s27 = sadd.s32 1, %s811_s18   ;;  %s28_s28 = sadd.s32 1, %s807_s17 }
   0xf   : > { %s1108_s23 = scalar_select %p893_p8, 1, 0 }
  0x10   : > { %p626_p9 = pneg %p893_p8  ;;  %s25_s29 = ssub.s32 %s811_s18, %s907_s27 }
  0x11   : > { %s700_s30 = scalar_lea.vmem %s160_s25, 512  ;;  %p708_p5 = scmp.lt.s32.totalorder %s160_s25, %s160_s25 }
  0x12   : > { %p902_p11 = pnand %p626_p9, %p1102_p1  ;;  %p701_p13 = scmp.ne.s32.totalorder %s160_s25, %s700_s30 }
  0x13   : > { %p709_p7 = scmp.lt.s32.totalorder %s700_s30, %s700_s30 }
  0x14   : > { %p691_p12 = pneg %p902_p11 }
  0x15   : > { %p710_p10 = por %p709_p7, %p708_p5 }
  0x16   : > { %p703_p0 = pnand %p701_p13, %p691_p12 }
  0x18   : > { %p704_p3 = pneg %p703_p0 }
  0x1a   : > { %p711_p2 = pnand %p710_p10, %p704_p3 }
  0x1c   : > { %714 = shalt.err (!%p711_p2)
}
  0x1d   : > { %s814_s5 = smov 256   ;;  %s815_s6 = smov 16  }
  0x1e   : > { %629 = dma.hbm_to_vmem [thread:$0]  (!%p902_p11), %s1100_s3, 512, %s160_s25, [#allocation6], %s814_s5, %s814_s5, %s815_s6  }
  0x1f   : > { %p26_p9 = scmp.eq.s32.totalorder %s25_s29, 0  ;;  %p35_p12 = scmp.ne.s32.totalorder %s807_s17, %s803_s16 }
  0x20   : > { %p36_p10 = scmp.eq.s32.totalorder %s811_s18, 0  ;;  %p639_p2 = scmp.lt.s32.totalorder %s811_s18, 2 }
  0x21   : > { %s924_s9 = scalar_select %p26_p9, %s807_s17, %s28_s28  }
  0x22   : > { %p37_p13 = por %p36_p10, %p35_p12  ;;  %p1110_p0 = scmp.eq.s32.totalorder %s874_s19, 1 }
  0x23   : > { %s173_s11 = sand.u32 1, %s807_s17   ;;  %s616_s12 = sshll.u32 %s811_s18, 7 }
  0x24   : > { %p928_p3 = por %p1110_p0, %p35_p12  ;;  %s599_s13 = sshll.u32 %s173_s11, 3 }
  0x25   : > { %s937_s24 = scalar_lea.hbm %s1097_s0, %s616_s12  ;;  %s177_s25 = scalar_lea.vmem [#allocation2], %s599_s13 }
  0x26   : > { %s1111_s10 = scalar_select %p928_p3, 1, 0 }
  0x27   : > { %s185_s26 = sshll.u32 %s177_s25, 4  ;;  %p939_p11 = pnand %p639_p2, %p37_p13  ;;  %s186_s26 = int_to_ptr.vmem [resolvable:$true] %s185_s26 }
  0x28   : > { %s174_s29 = scalar_lea.sflag [#allocation3], %s173_s11  ;;  %s715_s30 = scalar_lea.hbm %s937_s24, 128 }
  0x29   : > { %p716_p5 = scmp.ne.s32.totalorder %s937_s24, %s715_s30  ;;  %p717_p7 = pneg %p939_p11 }
  0x2a   : > { %s720_s7 = scalar_lea.hbm %s1097_s0, 256  ;;  %p721_p10 = scmp.lt.s32.totalorder %s937_s24, %s1097_s0 }
  0x2b   : > { %p718_p9 = pnand %p717_p7, %p716_p5  ;;  %p722_p2 = scmp.lt.s32.totalorder %s720_s7, %s715_s30 }
  0x2d   : > { %p719_p12 = pneg %p718_p9  ;;  %p723_p13 = por %p722_p2, %p721_p10 }
  0x2f   : > { %p724_p0 = pnand %p723_p13, %p719_p12 }
  0x31   : > { %727 = shalt.err (!%p724_p0)
}
  0x32   : > { %s728_s13 = scalar_lea.vmem %s186_s26, 128  ;;  %s816_s11 = smov [#allocation2]  }
  0x33   : > { %p729_p1 = scmp.ne.s32.totalorder %s186_s26, %s728_s13  ;;  %s733_s14 = sshll.u32 %s816_s11, 4  ;;  %s734_s14 = int_to_ptr.vmem [resolvable:$false] %s733_s14 }
  0x34   : > { %s735_s20 = scalar_lea.vmem %s734_s14, 256  ;;  %p736_p5 = scmp.lt.s32.totalorder %s186_s26, %s734_s14 }
  0x35   : > { %p731_p6 = pnand %p729_p1, %p717_p7  ;;  %p737_p9 = scmp.lt.s32.totalorder %s735_s20, %s728_s13 }
  0x37   : > { %p732_p3 = pneg %p731_p6  ;;  %p738_p4 = por %p737_p9, %p736_p5 }
  0x39   : > { %p739_p8 = pnand %p738_p4, %p732_p3 }
  0x3b   : > { %742 = shalt.err (!%p739_p8)
}
  0x3c   : > { %633 = dma.hbm_to_vmem [thread:$0]  (!%p939_p11), %s937_s24, 128, %s186_s26, %s174_s29  }
  0x3d   : > { %p1113_p12 = scmp.ne.s32.totalorder %s1108_s23, 0 }
  0x3e   : > { %s960_s25 = sand.u32 (!%p1113_p12), 1, %s803_s16   ;;  %p1114_p1 = scmp.ne.s32.totalorder (!%p1113_p12), %s1106_s21, 0 }
  0x3f   : > { %194 = sbr.rel (%p1113_p12) target bundleno = 434 (0x1b2), region = 36  ;;  %s603_s30 = sshll.u32 (!%p1113_p12), %s960_s25, 3 }
  0x40   : > { %s197_s5 = scalar_lea.sflag (!%p1113_p12), [#allocation3], %s960_s25  ;;  %s200_s6 = scalar_lea.vmem (!%p1113_p12), [#allocation2], %s603_s30 }
  0x44   : > { %786 = dma.done.wait (%p1114_p1), %s197_s5, 128  }
  0x45   : > { %788 = vsyncadd (%p1114_p1), %s197_s5, 4294967168  ;;  %p1115_p4 = scmp.eq.s32.totalorder %s874_s19, 0 }
  0x47   : > { %790 = dma.done.wait (%p1115_p4), [#allocation6], 512   ;;  %p1116_p6 = pmov %p1115_p4 }
  0x48   : > { %v972_v0 = vld [vmem:[%s200_s6] sm:$0xff]  ;;  %s817_s23 = smov 111   ;;  %s818_s24 = smov 112   ;;  %v823_v2 = vmov 0.0   ;;  %v824_v3 = vmov 0   ;;  %v243_v5 = vlaneseq  ;;  %v1004_v12 = vld [vmem:[#allocation5] sm:$0xff] }
  0x49   : > { %792 = vsyncadd (%p1116_p6), [#allocation6], 4294966784  ;;  %360 = vrot.lane.b32.xlu1 %v972_v0, %s817_s23  ;;  %343 = vrot.lane.b32.xlu0 %v972_v0, %s818_s24  ;;  %v978_v1 = vcombine.high %v972_v0, %v972_v0  ;;  %s819_s21 = smov 127   ;;  %s820_s26 = smov 113   ;;  %v230_v4 = vld [vmem:[%s1099_s2] sm:$0xff]  ;;  %v1006_v14 = vld [vmem:[#allocation5 + $0x8] sm:$0xff] }
  0x4a   : > { %s821_s28 = smov 1   ;;  %s822_s29 = smov 16   ;;  %489 = vmatprep.mubr.f32.mxu0 %v823_v2  ;;  %687 = vset.pattern.permute.xlu0 %v824_v3  ;;  %v997_v6 = vshrl.u32 %v243_v5, 7  ;;  %v999_v7 = vand.u32 127, %v243_v5  ;;  %v606_v13 = vld [vmem:[#allocation5 + $0x10] ss:$0 sm:$0xff] }
  0x4b   : > { %s825_s7 = smov 15   ;;  %s826_s8 = smov 17   ;;  %v607_v15 = vld [vmem:[#allocation5 + $0x18] ss:$0 sm:$0xff]  ;;  %vm401_vm2 = vcmask 1043456   ;;  %vm415_vm9 = vcmask 293888  }
  0x4c   : > { %v352_v10 = vsub.s32 7, %v997_v6  ;;  %vm364_vm0 = vcmp.lt.s32.totalorder %v999_v7, 111  ;;  %v318_v11 = vsub.s32 5, %v997_v6  ;;  %vm313_vm1 = vcmp.lt.s32.totalorder %v999_v7, 127  ;;  %s605_s20 = sshll.u32 %s960_s25, 4  ;;  %s617_s30 = sshll.u32 %s874_s19, 8 }
  0x4d   : > { %309 = vrot.lane.b32.xlu0 %v972_v0, %s819_s21  ;;  %362 = vrot.lane.b32.xlu1 %v978_v1, %s817_s23  ;;  %v335_v18 = vsub.s32 6, %v997_v6  ;;  %vm347_vm3 = vcmp.lt.s32.totalorder %v999_v7, 112  ;;  %vm330_vm4 = vcmp.lt.s32.totalorder %v999_v7, 113  ;;  %v301_v44 = vsub.s32 3, %v997_v6  ;;  %s228_s5 = scalar_lea.vmem [#allocation7], %s605_s20  ;;  %p1117_p3 = scmp.ne.s32.totalorder %s1111_s10, 0 }
  0x4e   : > { %v353_v21 = vrot.slane %v1004_v12, %v352_v10  ;;  %v323_v23 = vrot.slane %v1006_v14, %v318_v11  ;;  %v357_v24 = vrot.slane %v1006_v14, %v352_v10  ;;  %v319_v26 = vrot.slane %v1004_v12, %v318_v11  ;;  %s515_s6 = sshll.u32 %s228_s5, 4  ;;  %s516_s6 = int_to_ptr.vmem [resolvable:$true] %s515_s6 }
  0x4f   : > { %v336_v29 = vrot.slane %v1004_v12, %v335_v18  ;;  %v340_v37 = vrot.slane %v1006_v14, %v335_v18  ;;  %vm296_vm5 = vcmp.lt.s32.totalorder %v999_v7, 1  ;;  %v302_v54 = vrot.slane %v1004_v12, %v301_v44 }
  0x50   : > { %v306_v55 = vrot.slane %v1006_v14, %v301_v44  ;;  %v267_v56 = vsub.s32 1, %v997_v6  ;;  %v284_v60 = vsub.s32 2, %v997_v6  ;;  %vm262_vm6 = vcmp.lt.s32.totalorder %v999_v7, 16 }
  0x51   : > { %311 = vrot.lane.b32.xlu1 %v978_v1, %s819_s21  ;;  %345 = vrot.lane.b32.xlu0 %v978_v1, %s818_s24  ;;  %v250_v2 = vsub.s32 0, %v997_v6  ;;  %vm279_vm7 = vcmp.lt.s32.totalorder %v999_v7, 15  ;;  %vm245_vm8 = vcmp.lt.s32.totalorder %v999_v7, 17  ;;  %s513_s21 = scalar_lea.hbm %s1101_s4, %s617_s30 }
  0x52   : > { %v268_v5 = vrot.slane %v1004_v12, %v267_v56 }
  0x53   : > { %v251_v6 = vrot.slane %v1004_v12, %v250_v2 }
  0x55   : > { %328 = vrot.lane.b32.xlu1 %v978_v1, %s820_s26  ;;  %326 = vrot.lane.b32.xlu0 %v972_v0, %s820_s26  ;;  %s501_s26 = scalar_lea.sflag [#allocation4], %s960_s25 }
  0x59   : > { %294 = vrot.lane.b32.xlu1 %v978_v1, %s821_s28  ;;  %292 = vrot.lane.b32.xlu0 %v972_v0, %s821_s28  ;;  %s743_s28 = scalar_lea.vmem %s516_s6, 256 }
  0x5a   : > { %p744_p8 = scmp.ne.s32.totalorder %s516_s6, %s743_s28 }
  0x5c   : > { %p745_p11 = pnand %p744_p8, %p1117_p3 }
  0x5d   : > { %260 = vrot.lane.b32.xlu1 %v978_v1, %s822_s29  ;;  %258 = vrot.lane.b32.xlu0 %v972_v0, %s822_s29  ;;  %s827_s29 = smov [#allocation7]  }
  0x5e   : > { %p746_p7 = pneg %p745_p11  ;;  %s747_s19 = sshll.u32 %s827_s29, 4  ;;  %s748_s19 = int_to_ptr.vmem [resolvable:$false] %s747_s19 }
  0x5f   : > { %p750_p10 = scmp.lt.s32.totalorder %s516_s6, %s748_s19 }
  0x61   : > { %277 = vrot.lane.b32.xlu1 %v978_v1, %s825_s7  ;;  %275 = vrot.lane.b32.xlu0 %v972_v0, %s825_s7  ;;  %s749_s7 = scalar_lea.vmem %s748_s19, 512 }
  0x62   : > { %p751_p2 = scmp.lt.s32.totalorder %s749_s7, %s743_s28 }
  0x64   : > { %p752_p13 = por %p751_p2, %p750_p10 }
  0x65   : > { %241 = vrot.lane.b32.xlu1 %v978_v1, %s826_s8  ;;  %239 = vrot.lane.b32.xlu0 %v972_v0, %s826_s8 }
  0x66   : > { %p753_p0 = pnand %p752_p13, %p746_p7 }
  0x69   : > { %412 = vperm.xlu0 %687, %v230_v4  }
  0xbb   : > { %v361_v8 = vpop.permute.xlu1 %360  ;;  %v344_v9 = vpop.permute.xlu0 %343 }
  0xbf   : > { %v310_v16 = vpop.permute.xlu0 %309  ;;  %v363_v17 = vpop.permute.xlu1 %362 }
  0xc0   : > { %v365_v19 = vsel %vm364_vm0, %v361_v8, %v363_v17  ;;  %v366_v20 = vsel %vm364_vm0, %v363_v17, %v361_v8  ;;  %v272_v8 = vrot.slane %v1006_v14, %v267_v56 }
  0xc1   : > { %v375_v22 = vmul.f32 %v606_v13, %v365_v19  ;;  %v376_v25 = vmul.f32 %v607_v15, %v366_v20  ;;  %v255_v15 = vrot.slane %v1006_v14, %v250_v2 }
  0xc3   : > { %v312_v27 = vpop.permute.xlu1 %311  ;;  %v346_v28 = vpop.permute.xlu0 %345  ;;  %608 = vmatprep.subr.msk.mxu0 %vm401_vm2, %v376_v25 }
  0xc4   : > { %v314_v30 = vsel %vm313_vm1, %v310_v16, %v312_v27  ;;  %v315_v31 = vsel %vm313_vm1, %v312_v27, %v310_v16  ;;  %v348_v32 = vsel %vm347_vm3, %v344_v9, %v346_v28  ;;  %v349_v33 = vsel %vm347_vm3, %v346_v28, %v344_v9  ;;  %609 = vmatpush1.msk.msra.mxu0 %vm401_vm2, %v375_v22 }
  0xc5   : > { %v325_v34 = vmul.f32 %v323_v23, %v315_v31  ;;  %v358_v35 = vmul.f32 %v353_v21, %v348_v32  ;;  %v359_v36 = vmul.f32 %v357_v24, %v349_v33  ;;  %v324_v38 = vmul.f32 %v319_v26, %v314_v30 }
  0xc6   : > { %v289_v9 = vrot.slane %v1006_v14, %v284_v60 }
  0xc7   : > { %v329_v39 = vpop.permute.xlu1 %328  ;;  %v327_v40 = vpop.permute.xlu0 %326  ;;  %v392_v41 = vrot.slane %v325_v34, 4  ;;  %v397_v45 = vrot.slane %v358_v35, 4  ;;  %v398_v46 = vrot.slane %v359_v36, 4  ;;  %v391_v49 = vrot.slane %v324_v38, 4  ;;  %v229_v34 = vld [vmem:[%s1098_s1] sm:$0xff] }
  0xc8   : > { %v331_v42 = vsel %vm330_vm4, %v327_v40, %v329_v39  ;;  %v332_v43 = vsel %vm330_vm4, %v329_v39, %v327_v40 }
  0xc9   : > { %v341_v47 = vmul.f32 %v336_v29, %v331_v42  ;;  %v342_v48 = vmul.f32 %v340_v37, %v332_v43  ;;  %v407_v59 = vsel %vm401_vm2, %v978_v1, %v392_v41  ;;  %v406_v61 = vsel %vm401_vm2, %v972_v0, %v391_v49 }
  0xca   : > { %v285_v1 = vrot.slane %v1004_v12, %v284_v60 }
  0xcb   : > { %v295_v50 = vpop.permute.xlu1 %294  ;;  %v293_v51 = vpop.permute.xlu0 %292  ;;  %v409_v52 = vsel %vm401_vm2, %v342_v48, %v398_v46  ;;  %v408_v53 = vsel %vm401_vm2, %v341_v47, %v397_v45 }
  0xcc   : > { %449 = vmatprep.subr.mxu0 %v409_v52  ;;  %v297_v57 = vsel %vm296_vm5, %v293_v51, %v295_v50  ;;  %v298_v58 = vsel %vm296_vm5, %v295_v50, %v293_v51 }
  0xcd   : > { %450 = vmatpush1.msra.mxu0 %v408_v53  ;;  %v307_v3 = vmul.f32 %v302_v54, %v298_v58  ;;  %v308_v4 = vmul.f32 %v306_v55, %v297_v57 }
  0xce   : > { %451 = vmatprep.subr.mxu0 %v407_v59 }
  0xcf   : > { %v261_v62 = vpop.permute.xlu1 %260  ;;  %v259_v63 = vpop.permute.xlu0 %258  ;;  %452 = vmatpush1.msra.mxu0 %v406_v61  ;;  %v385_v16 = vrot.slane %v307_v3, 4  ;;  %v386_v17 = vrot.slane %v308_v4, 4 }
  0xd0   : > { %v263_v0 = vsel %vm262_vm6, %v259_v63, %v261_v62  ;;  %v264_v10 = vsel %vm262_vm6, %v261_v62, %v259_v63 }
  0xd1   : > { %v273_v20 = vmul.f32 %v268_v5, %v264_v10  ;;  %v274_v21 = vmul.f32 %v272_v8, %v263_v0 }
  0xd3   : > { %v278_v11 = vpop.permute.xlu1 %277  ;;  %v276_v13 = vpop.permute.xlu0 %275  ;;  %v379_v28 = vrot.slane %v273_v20, 4  ;;  %v380_v29 = vrot.slane %v274_v21, 4 }
  0xd4   : > { %v280_v18 = vsel %vm279_vm7, %v276_v13, %v278_v11  ;;  %v281_v19 = vsel %vm279_vm7, %v278_v11, %v276_v13 }
  0xd5   : > { %v290_v22 = vmul.f32 %v285_v1, %v281_v19  ;;  %v291_v23 = vmul.f32 %v289_v9, %v280_v18 }
  0xd7   : > { %v242_v24 = vpop.permute.xlu1 %241  ;;  %v240_v25 = vpop.permute.xlu0 %239  ;;  %v405_v26 = vsel %vm401_vm2, %v291_v23, %v386_v17  ;;  %v404_v27 = vsel %vm401_vm2, %v290_v22, %v385_v16 }
  0xd8   : > { %v246_v12 = vsel %vm245_vm8, %v240_v25, %v242_v24  ;;  %v247_v14 = vsel %vm245_vm8, %v242_v24, %v240_v25  ;;  %453 = vmatprep.subr.mxu0 %v405_v26 }
  0xd9   : > { %v256_v30 = vmul.f32 %v251_v6, %v247_v14  ;;  %v257_v31 = vmul.f32 %v255_v15, %v246_v12  ;;  %454 = vmatpush1.msra.mxu0 %v404_v27 }
  0xdb   : > { %v403_v32 = vsel %vm401_vm2, %v257_v31, %v380_v29  ;;  %v402_v33 = vsel %vm401_vm2, %v256_v30, %v379_v28 }
  0xdc   : > { %455 = vmatprep.subr.mxu0 %v403_v32 }
  0xdd   : > { %456 = vmatpush1.msra.mxu0 %v402_v33 }
  0xde   : > { %610 = vmatmul.mubr.msk.f32.vlgmr.msra.gmra.mxu0 %vm415_vm9, %v229_v34 }
  0xe4   : > { %v413_v7 = vpop.permute.xlu0 %412 }
 0x19e   : > { %v491_v35 = vpop.f32.mrf.mxu0 }
 0x19f   : > { %v492_v36 = vadd.f32 %v491_v35, %v413_v7 }
 0x1a0   : > { %v493_v37 = vpop.f32.mrf.mxu0 }
 0x1a1   : > { %v496_v38 = vmax.f32 %v492_v36, 0.0  ;;  %v494_v39 = vadd.f32 %v493_v37, %v413_v7 }
 0x1a3   : > { %498 = vst [vmem:[%s228_s5] sm:$0xff] %v496_v38  ;;  %v497_v40 = vmax.f32 %v494_v39, 0.0 }
 0x1a5   : > { %499 = vst [vmem:[%s228_s5 + $0x8] sm:$0xff] %v497_v40 }
 0x1a6   : > { %756 = shalt.err (!%p753_p0)
}
 0x1a7   : > { %s757_s8 = scalar_lea.hbm %s513_s21, 256  ;;  %s761_s13 = scalar_lea.hbm %s1101_s4, 512 }
 0x1a8   : > { %p758_p5 = scmp.ne.s32.totalorder %s513_s21, %s757_s8  ;;  %p762_p1 = scmp.lt.s32.totalorder %s513_s21, %s1101_s4 }
 0x1a9   : > { %p763_p4 = scmp.lt.s32.totalorder %s761_s13, %s757_s8 }
 0x1aa   : > { %p759_p9 = pnand %p758_p5, %p1117_p3 }
 0x1ab   : > { %p764_p6 = por %p763_p4, %p762_p1 }
 0x1ac   : > { %p760_p12 = pneg %p759_p9 }
 0x1ae   : > { %p765_p8 = pnand %p764_p6, %p760_p12 }
 0x1b0   : > { %768 = shalt.err (!%p765_p8)
}
 0x1b1   : > { %624 = dma.vmem_to_hbm [thread:$0]  (%p1117_p3), %s516_s6, 256, %s513_s21, %s501_s26  }
 0x1b2 PF: > { %s527_s20 = sand.u32 1, %s799_s15   ;;  %p1118_p11 = scmp.ne.s32.totalorder %s1107_s22, 0 }
 0x1b3   : > { %p1119_p7 = scmp.ge.s32.totalorder %s811_s18, 2  ;;  %s528_s30 = scalar_lea.sflag [#allocation4], %s527_s20 }
 0x1b5   : > { %p635_p10 = pnand %p1119_p7, %p1118_p11 }
 0x1b7   : > { %p636_p2 = pneg %p635_p10 }
 0x1b9   : > { %794 = dma.done.wait (%p636_p2), %s528_s30, 256  }
 0x1ba   : > { %796 = vsyncadd (%p636_p2), %s528_s30, 4294967040  ;;  %p18_p13 = scmp.ge.s32.totalorder %s907_s27, 4   ;;  %s1120_s15 = smov %s803_s16 }
 0x1bb   : > { %s1121_s16 = smov %s807_s17  ;;  %s1122_s17 = smov %s924_s9 }
 0x1bc   : > { %s1123_s18 = smov %s907_s27  ;;  %20 = sbr.rel (!%p18_p13) target bundleno = 6 (0x6), region = 85 }
 0x1c1   :  { %533 = vsyncpa [#allocation3], 1 }
 0x1c2   :  { %535 = vsyncpa [#allocation3 + $0x1], 1 }
 0x1c3   :  { %536 = vsyncpa [#allocation6], 1 }
 0x1c4   :  { %537 = vsyncpa [#allocation4], 1 }
 0x1c5   :  { %539 = vsyncpa [#allocation4 + $0x1], 1 }

</bundles_post_ra>
